<compile_context>
chip_gen: v7x
topology: tpu7x:2x2x1
jax: 0.10.0
libtpu: 0.0.40
codegen_flags: <defaults>
</compile_context>

<pallas_src>
import functools
import math

import jax
import jax.numpy as jnp
from jax.experimental import pallas as pl
from jax.experimental.pallas import tpu as pltpu


def _round_up(x, m):
    return (x + m - 1) // m * m


def _cdiv(a, b):
    return (a + b - 1) // b


def _vmem_capacity_bytes():
    """Physical per-core VMEM; conservative 64 MiB (v7x per-TC) fallback."""
    try:
        cap = int(pltpu.get_tpu_info().vmem_capacity_bytes)
        if cap > 0:
            return cap
    except Exception:
        pass
    return 64 * 1024 * 1024


def _mxu_lane_align():
    """256 on v6e/v7x (2x256^2 MXU), 128 otherwise (v5e: 128-wide passes fill it)."""
    try:
        kind = jax.devices()[0].device_kind.lower()
    except Exception:
        return 128
    if ("v6" in kind) or ("v7" in kind) or ("7x" in kind):
        return 256
    return 128


def _ffn_kernel(x_ref, gamma_ref, beta_ref, w1_ref, b1_ref, w2_ref, b2_ref,
                o_ref, xn_ref, acc_ref, *, inv_d):
    h = pl.program_id(1)

    @pl.when(h == 0)
    def _():
        # Single-pass LayerNorm in f32 (biased variance, eps=1e-5: nn.LayerNorm default).
        # Padded d_in lanes are zero in x/gamma/beta/w1 and the statistics divide by the
        # TRUE d_in, so the padding is exact.
        x = x_ref[...].astype(jnp.float32)
        s1 = jnp.sum(x, axis=-1, keepdims=True)
        s2 = jnp.sum(x * x, axis=-1, keepdims=True)
        mean = s1 * inv_d
        var = jnp.maximum(s2 * inv_d - mean * mean, 0.0)
        xn = (x - mean) * jax.lax.rsqrt(var + 1e-5)
        xn = xn * gamma_ref[...] + beta_ref[...]
        xn_ref[...] = xn.astype(xn_ref.dtype)        # native weight dtype into the MXU
        acc_ref[...] = jnp.zeros_like(acc_ref)

    # --- linear1 on this hidden block; bias + ReLU fused with the downcast ---
    hblk = jnp.dot(xn_ref[...], w1_ref[...], preferred_element_type=jnp.float32)
    hblk = jnp.maximum(hblk + b1_ref[...], 0.0).astype(w2_ref.dtype)

    # TODO(synk): nn.Dropout is identity at inference (eval mode); training-time
    # stochastic masking (pltpu.prng_*) is not implemented here.

    # --- linear2 partial product, accumulated in f32 across hidden blocks ---
    acc_ref[...] += jnp.dot(hblk, w2_ref[...], preferred_element_type=jnp.float32)

    @pl.when(h == pl.num_programs(1) - 1)
    def _():
        o_ref[...] = (acc_ref[...] + b2_ref[...]).astype(o_ref.dtype)


def feed_forward_layer(x, gamma, beta, w1, b1, w2, b2, *, tm=512,
                       force_hidden_blocks=None):
    """x: [B, S, d_in] -> [B, S, d_out].

    Params in 'math' layout: w1: [d_in, hidden], w2: [hidden, d_out] (transposed vs
    torch nn.Linear.weight).  Weights are fed to the MXU in their native dtype — pass
    bf16 weights on v6e/v7x for the fast path; accumulation is always f32.
    """
    B, S, d_in = x.shape
    assert w1.shape[0] == d_in
    hidden = w1.shape[1]
    assert w2.shape[0] == hidden
    d_out = w2.shape[1]
    N = B * S

    x_isz = jnp.dtype(x.dtype).itemsize
    w_isz = jnp.dtype(w1.dtype).itemsize
    o_isz = x_isz

    align = _mxu_lane_align()
    d_in_p = _round_up(d_in, 128)         # lane-dense K / LN reductions
    d_out_p = _round_up(d_out, align)     # lane-dense output store, MXU-N-full on v6e/v7x

    vmem_limit = int(_vmem_capacity_bytes() * 3 // 4)   # headroom for compiler scratch

    def row_tile_bytes(t):
        return (2 * t * d_in_p * x_isz        # x double buffer
                + 2 * t * d_out_p * o_isz     # out double buffer
                + t * d_in_p * w_isz          # xn scratch
                + t * d_out_p * 4)            # f32 accumulator scratch

    # Row tile: multiple of 8 sublanes; keep >=2 row steps so the "parallel" axis can
    # split across TensorCores (v7x megacore); shrink until the per-row-tile VMEM fits.
    tm_eff = min(tm, _round_up(N, 8))
    if N >= 16:
        tm_eff = min(tm_eff, _round_up(_cdiv(N, 2), 8))
    tm_eff = max(8, _round_up(tm_eff, 8))
    while tm_eff > 8 and row_tile_bytes(tm_eff) > vmem_limit // 2:
        tm_eff = max(8, _round_up(tm_eff // 2, 8))
    n_pad = _round_up(N, tm_eff)
    n_rows = n_pad // tm_eff

    # Hidden split (K of linear2 / N of linear1) so weight blocks fit the VMEM budget.
    const_bytes = (2 * d_in_p + d_out_p) * 4 * 2
    weight_budget = vmem_limit - row_tile_bytes(tm_eff) - const_bytes - (4 << 20)
    hidden_p = _round_up(hidden, align)
    if force_hidden_blocks is not None:
        n_h = max(1, int(force_hidden_blocks))
    elif (d_in_p * hidden_p + hidden_p * d_out_p) * w_isz <= weight_budget:
        n_h = 1                                   # fully resident weights
    else:
        per_block = max(weight_budget // 2, 1)    # streamed weight blocks double-buffer
        cols = max(1, per_block // ((d_in_p + d_out_p) * w_isz))
        tk0 = max(128, cols // 128 * 128)
        n_h = _cdiv(hidden_p, tk0)
    tk = _round_up(_cdiv(hidden_p, n_h), 128)
    n_h = _cdiv(hidden_p, tk)
    hidden_pp = n_h * tk
    # TODO(synk): if a single (d_in_p,128)+(128,d_out_p) weight block still exceeds VMEM
    # (giant d_in*d_out), a d_out split would also be needed; not implemented.

    # Zero padding: padded rows are harmless (sliced off), padded lanes/cols are exact
    # because gamma/beta/weights/biases are zero there.
    x2d = jnp.pad(x.reshape(N, d_in), ((0, n_pad - N), (0, d_in_p - d_in)))
    gamma2d = jnp.pad(gamma.astype(jnp.float32), (0, d_in_p - d_in)).reshape(1, d_in_p)
    beta2d = jnp.pad(beta.astype(jnp.float32), (0, d_in_p - d_in)).reshape(1, d_in_p)
    w1p = jnp.pad(w1, ((0, d_in_p - d_in), (0, hidden_pp - hidden)))
    b1p = jnp.pad(b1.astype(jnp.float32), (0, hidden_pp - hidden)).reshape(1, hidden_pp)
    w2p = jnp.pad(w2, ((0, hidden_pp - hidden), (0, d_out_p - d_out)))
    b2p = jnp.pad(b2.astype(jnp.float32), (0, d_out_p - d_out)).reshape(1, d_out_p)

    grid = (n_rows, n_h)

    w_bytes = w1p.size * w1p.dtype.itemsize + w2p.size * w2p.dtype.itemsize
    w_passes = 1 if n_h == 1 else n_rows    # streamed weight blocks re-read per row tile
    flops = 2 * n_pad * d_in_p * hidden_pp + 2 * n_pad * hidden_pp * d_out_p
    bytes_accessed = (x2d.size * x_isz + n_pad * d_out_p * o_isz
                      + w_passes * w_bytes
                      + (gamma2d.size + beta2d.size + b1p.size + b2p.size) * 4)
    cost = pl.CostEstimate(flops=flops, transcendentals=n_pad,
                           bytes_accessed=bytes_accessed)

    def build_in_specs(single_buffer):
        resident = pl.Buffered(1) if single_buffer else None
        w_resident = resident if n_h == 1 else None   # weight blocks stream when split

        def spec(shape, index_map, mode):
            if mode is not None:
                return pl.BlockSpec(shape, index_map, pipeline_mode=mode)
            return pl.BlockSpec(shape, index_map)

        return [
            spec((tm_eff, d_in_p), lambda i, h: (i, 0), None),       # x rows (streamed)
            spec((1, d_in_p), lambda i, h: (0, 0), resident),         # gamma
            spec((1, d_in_p), lambda i, h: (0, 0), resident),         # beta
            spec((d_in_p, tk), lambda i, h: (0, h), w_resident),      # w1 block
            spec((1, tk), lambda i, h: (0, h), w_resident),           # b1 block
            spec((tk, d_out_p), lambda i, h: (h, 0), w_resident),     # w2 block
            spec((1, d_out_p), lambda i, h: (0, 0), resident),        # b2
        ]

    def run(single_buffer):
        return pl.pallas_call(
            functools.partial(_ffn_kernel, inv_d=1.0 / d_in),
            out_shape=jax.ShapeDtypeStruct((n_pad, d_out_p), x.dtype),
            grid_spec=pltpu.PrefetchScalarGridSpec(
                num_scalar_prefetch=0,
                grid=grid,
                in_specs=build_in_specs(single_buffer),
                out_specs=pl.BlockSpec((tm_eff, d_out_p), lambda i, h: (i, 0)),
                scratch_shapes=[
                    pltpu.VMEM((tm_eff, d_in_p), w1.dtype),      # normalized x
                    pltpu.VMEM((tm_eff, d_out_p), jnp.float32),  # output accumulator
                ],
            ),
            compiler_params=pltpu.CompilerParams(
                dimension_semantics=("parallel", "arbitrary"),
                vmem_limit_bytes=vmem_limit,
            ),
            cost_estimate=cost,
        )(x2d, gamma2d, beta2d, w1p, b1p, w2p, b2p)

    try:
        out2d = run(True)     # single-buffer the resident/constant operands
    except Exception:
        out2d = run(False)    # fall back to default double-buffering

    return out2d[:N, :d_out].reshape(B, S, d_out)


def init_params(key, d_in, d_out, r_ff=4, dtype=jnp.float32):
    """Deterministic init mirroring FeedForwardLayer.reset_parameter():
       - linear1.weight: kaiming_normal (relu) -> N(0, sqrt(2/d_in)); linear1.bias: zeros
       - linear2.weight: kaiming_normal (relu) -> N(0, sqrt(2/hidden))
       - linear2.bias: default nn.Linear init U(-1/sqrt(hidden), 1/sqrt(hidden))
         (reset_parameter zeros linear1.bias twice, leaving linear2.bias at default)
       - LayerNorm: gamma=1, beta=0
    """
    hidden = d_out * r_ff
    k1, k2, k3 = jax.random.split(key, 3)

    std1 = math.sqrt(2.0 / d_in)
    w1 = (jax.random.normal(k1, (d_in, hidden), dtype=jnp.float32) * std1).astype(dtype)
    b1 = jnp.zeros((hidden,), dtype=dtype)

    std2 = math.sqrt(2.0 / hidden)
    w2 = (jax.random.normal(k2, (hidden, d_out), dtype=jnp.float32) * std2).astype(dtype)
    bound = 1.0 / math.sqrt(hidden)
    b2 = jax.random.uniform(k3, (d_out,), minval=-bound, maxval=bound,
                            dtype=jnp.float32).astype(dtype)

    gamma = jnp.ones((d_in,), dtype=dtype)
    beta = jnp.zeros((d_in,), dtype=dtype)
    return gamma, beta, w1, b1, w2, b2


def _reference(x, gamma, beta, w1, b1, w2, b2):
    # Pure-JAX reference (f32 math) for sanity checking.
    xf = x.astype(jnp.float32)
    mean = jnp.mean(xf, axis=-1, keepdims=True)
    var = jnp.mean((xf - mean) ** 2, axis=-1, keepdims=True)
    xn = (xf - mean) * jax.lax.rsqrt(var + 1e-5) * gamma.astype(jnp.float32) \
         + beta.astype(jnp.float32)
    h = jnp.maximum(xn @ w1.astype(jnp.float32) + b1.astype(jnp.float32), 0.0)
    return h @ w2.astype(jnp.float32) + b2.astype(jnp.float32)


if __name__ == "__main__":
    key = jax.random.PRNGKey(0)
    k_x, k_p, k_x2, k_p2 = jax.random.split(key, 4)

    B, S = 2, 8

    # --- test 1: small shapes, f32 (matches the PyTorch module's numerics) ---
    d_in, d_out, r_ff = 32, 32, 4        # hidden = 128
    x = jax.random.normal(k_x, (B, S, d_in), dtype=jnp.float32)
    gamma, beta, w1, b1, w2, b2 = init_params(k_p, d_in, d_out, r_ff)
    out = jax.block_until_ready(feed_forward_layer(x, gamma, beta, w1, b1, w2, b2))
    ref = _reference(x, gamma, beta, w1, b1, w2, b2)
    assert out.shape == (B, S, d_out)
    assert jnp.allclose(out, ref, atol=1e-4, rtol=1e-4), "f32 mismatch vs reference"

    # --- test 2: ragged dims + forced hidden split (exercises the K-split accumulator) ---
    d_in2, d_out2, r_ff2 = 48, 64, 4     # hidden = 256
    x2 = jax.random.normal(k_x2, (B, S, d_in2), dtype=jnp.float32)
    g2, be2, w1_2, b1_2, w2_2, b2_2 = init_params(k_p2, d_in2, d_out2, r_ff2)
    out2 = jax.block_until_ready(
        feed_forward_layer(x2, g2, be2, w1_2, b1_2, w2_2, b2_2, force_hidden_blocks=2))
    ref2 = _reference(x2, g2, be2, w1_2, b1_2, w2_2, b2_2)
    assert out2.shape == (B, S, d_out2)
    assert jnp.allclose(out2, ref2, atol=1e-4, rtol=1e-4), "split-path mismatch vs reference"

    # --- test 3: bf16 weights/activations straight into the MXU (f32 accumulate) ---
    xb = x.astype(jnp.bfloat16)
    w1b, w2b = w1.astype(jnp.bfloat16), w2.astype(jnp.bfloat16)
    outb = jax.block_until_ready(feed_forward_layer(xb, gamma, beta, w1b, b1, w2b, b2))
    refb = _reference(xb, gamma, beta, w1b, b1, w2b, b2)
    assert outb.shape == (B, S, d_out)
    assert jnp.allclose(outb.astype(jnp.float32), refb, atol=7e-2, rtol=7e-2), \
        "bf16 mismatch vs reference"

    print("KERNEL_OK")
</pallas_src>

<mosaic_0001>
module attributes {stable_mosaic.version = 11 : i64} {
  func.func @_ffn_kernel(%arg0: i32, %arg1: i32, %arg2: memref<8x128xf32, #tpu.memory_space<vmem>>, %arg3: memref<1x128xf32, #tpu.memory_space<vmem>>, %arg4: memref<1x128xf32, #tpu.memory_space<vmem>>, %arg5: memref<128x128xf32, #tpu.memory_space<vmem>>, %arg6: memref<1x128xf32, #tpu.memory_space<vmem>>, %arg7: memref<128x128xf32, #tpu.memory_space<vmem>>, %arg8: memref<1x128xf32, #tpu.memory_space<vmem>>, %arg9: memref<8x128xf32, #tpu.memory_space<vmem>>, %arg10: memref<8x128xf32, #tpu.memory_space<vmem>>, %arg11: memref<8x128xf32, #tpu.memory_space<vmem>>) attributes {dimension_semantics = [#tpu.dimension_semantics<parallel>, #tpu.dimension_semantics<arbitrary>], iteration_bounds = array<i64: 2, 1>, scalar_prefetch = 0 : i64, scratch_operands = 2 : i64, tpu.core_type = #tpu.core_type<tc>, window_params = [{transform_indices = @transform_0, window_bounds = array<i64: 8, 128>}, {pipeline_mode = #tpu.pipeline_mode<synchronous>, transform_indices = @transform_1, window_bounds = array<i64: 1, 128>}, {pipeline_mode = #tpu.pipeline_mode<synchronous>, transform_indices = @transform_2, window_bounds = array<i64: 1, 128>}, {pipeline_mode = #tpu.pipeline_mode<synchronous>, transform_indices = @transform_3, window_bounds = array<i64: 128, 128>}, {pipeline_mode = #tpu.pipeline_mode<synchronous>, transform_indices = @transform_4, window_bounds = array<i64: 1, 128>}, {pipeline_mode = #tpu.pipeline_mode<synchronous>, transform_indices = @transform_5, window_bounds = array<i64: 128, 128>}, {pipeline_mode = #tpu.pipeline_mode<synchronous>, transform_indices = @transform_6, window_bounds = array<i64: 1, 128>}, {transform_indices = @transform_7, window_bounds = array<i64: 8, 128>}]} {
    %c0_i32 = arith.constant 0 : i32
    %0 = arith.cmpi eq, %arg1, %c0_i32 : i32
    %1 = arith.extui %0 : i1 to i32
    %c0_i32_0 = arith.constant 0 : i32
    %2 = arith.cmpi ne, %1, %c0_i32_0 : i32
    scf.if %2 {
      %c0_16 = arith.constant 0 : index
      %c0_17 = arith.constant 0 : index
      %19 = vector.load %arg2[%c0_16, %c0_17] : memref<8x128xf32, #tpu.memory_space<vmem>>, vector<8x128xf32>
      %cst_18 = arith.constant dense<0.000000e+00> : vector<8xf32>
      %20 = vector.multi_reduction <add>, %19, %cst_18 [1] : vector<8x128xf32> to vector<8xf32>
      %21 = vector.shape_cast %20 : vector<8xf32> to vector<8x1xf32>
      %22 = arith.mulf %19, %19 : vector<8x128xf32>
      %cst_19 = arith.constant dense<0.000000e+00> : vector<8xf32>
      %23 = vector.multi_reduction <add>, %22, %cst_19 [1] : vector<8x128xf32> to vector<8xf32>
      %24 = vector.shape_cast %23 : vector<8xf32> to vector<8x1xf32>
      %cst_20 = arith.constant 3.125000e-02 : f32
      %25 = vector.broadcast %cst_20 : f32 to vector<8x1xf32>
      %26 = arith.mulf %21, %25 : vector<8x1xf32>
      %cst_21 = arith.constant 3.125000e-02 : f32
      %27 = vector.broadcast %cst_21 : f32 to vector<8x1xf32>
      %28 = arith.mulf %24, %27 : vector<8x1xf32>
      %29 = arith.mulf %26, %26 : vector<8x1xf32>
      %30 = arith.subf %28, %29 : vector<8x1xf32>
      %cst_22 = arith.constant 0.000000e+00 : f32
      %31 = vector.broadcast %cst_22 : f32 to vector<8x1xf32>
      %32 = arith.maximumf %30, %31 : vector<8x1xf32>
      %33 = vector.broadcast %26 : vector<8x1xf32> to vector<8x128xf32>
      %34 = arith.subf %19, %33 : vector<8x128xf32>
      %cst_23 = arith.constant 9.99999974E-6 : f32
      %35 = vector.broadcast %cst_23 : f32 to vector<8x1xf32>
      %36 = arith.addf %32, %35 : vector<8x1xf32>
      %37 = math.rsqrt %36 : vector<8x1xf32>
      %38 = vector.broadcast %37 : vector<8x1xf32> to vector<8x128xf32>
      %39 = arith.mulf %34, %38 : vector<8x128xf32>
      %c0_24 = arith.constant 0 : index
      %c0_25 = arith.constant 0 : index
      %40 = vector.load %arg3[%c0_24, %c0_25] : memref<1x128xf32, #tpu.memory_space<vmem>>, vector<1x128xf32>
      %41 = vector.broadcast %40 : vector<1x128xf32> to vector<8x128xf32>
      %42 = arith.mulf %39, %41 : vector<8x128xf32>
      %c0_26 = arith.constant 0 : index
      %c0_27 = arith.constant 0 : index
      %43 = vector.load %arg4[%c0_26, %c0_27] : memref<1x128xf32, #tpu.memory_space<vmem>>, vector<1x128xf32>
      %44 = vector.broadcast %43 : vector<1x128xf32> to vector<8x128xf32>
      %45 = arith.addf %42, %44 : vector<8x128xf32>
      %c0_28 = arith.constant 0 : index
      %c0_29 = arith.constant 0 : index
      %46 = vector.load %arg10[%c0_28, %c0_29] : memref<8x128xf32, #tpu.memory_space<vmem>>, vector<8x128xf32>
      tpu.vector_store %arg10[%c0_28, %c0_29], %45 {strides = array<i32>} : memref<8x128xf32, #tpu.memory_space<vmem>>, vector<8x128xf32>,
      %cst_30 = arith.constant 0.000000e+00 : f32
      %47 = vector.broadcast %cst_30 : f32 to vector<8x128xf32>
      %c0_31 = arith.constant 0 : index
      %c0_32 = arith.constant 0 : index
      %48 = vector.load %arg11[%c0_31, %c0_32] : memref<8x128xf32, #tpu.memory_space<vmem>>, vector<8x128xf32>
      tpu.vector_store %arg11[%c0_31, %c0_32], %47 {strides = array<i32>} : memref<8x128xf32, #tpu.memory_space<vmem>>, vector<8x128xf32>,
    } else {
    }
    %c0 = arith.constant 0 : index
    %c0_1 = arith.constant 0 : index
    %3 = vector.load %arg10[%c0, %c0_1] : memref<8x128xf32, #tpu.memory_space<vmem>>, vector<8x128xf32>
    %c0_2 = arith.constant 0 : index
    %c0_3 = arith.constant 0 : index
    %4 = vector.load %arg5[%c0_2, %c0_3] : memref<128x128xf32, #tpu.memory_space<vmem>>, vector<128x128xf32>
    %cst = arith.constant dense<0.000000e+00> : vector<8x128xf32>
    %5 = tpu.matmul %3, %4, %cst {dimension_numbers = #tpu.dot_dimension_numbers<[1], [0], [0], [1], [0, 0, 1, 1], [], []>} : vector<8x128xf32>, vector<128x128xf32>, vector<8x128xf32> -> vector<8x128xf32>
    %c0_4 = arith.constant 0 : index
    %c0_5 = arith.constant 0 : index
    %6 = vector.load %arg6[%c0_4, %c0_5] : memref<1x128xf32, #tpu.memory_space<vmem>>, vector<1x128xf32>
    %7 = vector.broadcast %6 : vector<1x128xf32> to vector<8x128xf32>
    %8 = arith.addf %5, %7 : vector<8x128xf32>
    %cst_6 = arith.constant 0.000000e+00 : f32
    %9 = vector.broadcast %cst_6 : f32 to vector<8x128xf32>
    %10 = arith.maximumf %8, %9 : vector<8x128xf32>
    %c0_7 = arith.constant 0 : index
    %c0_8 = arith.constant 0 : index
    %11 = vector.load %arg11[%c0_7, %c0_8] : memref<8x128xf32, #tpu.memory_space<vmem>>, vector<8x128xf32>
    %c0_9 = arith.constant 0 : index
    %c0_10 = arith.constant 0 : index
    %12 = vector.load %arg7[%c0_9, %c0_10] : memref<128x128xf32, #tpu.memory_space<vmem>>, vector<128x128xf32>
    %cst_11 = arith.constant dense<0.000000e+00> : vector<8x128xf32>
    %13 = tpu.matmul %10, %12, %cst_11 {dimension_numbers = #tpu.dot_dimension_numbers<[1], [0], [0], [1], [0, 0, 1, 1], [], []>} : vector<8x128xf32>, vector<128x128xf32>, vector<8x128xf32> -> vector<8x128xf32>
    %14 = arith.addf %11, %13 : vector<8x128xf32>
    %c0_12 = arith.constant 0 : index
    %c0_13 = arith.constant 0 : index
    %15 = vector.load %arg11[%c0_12, %c0_13] : memref<8x128xf32, #tpu.memory_space<vmem>>, vector<8x128xf32>
    tpu.vector_store %arg11[%c0_12, %c0_13], %14 {strides = array<i32>} : memref<8x128xf32, #tpu.memory_space<vmem>>, vector<8x128xf32>,
    %c0_i32_14 = arith.constant 0 : i32
    %16 = arith.cmpi eq, %arg1, %c0_i32_14 : i32
    %17 = arith.extui %16 : i1 to i32
    %c0_i32_15 = arith.constant 0 : i32
    %18 = arith.cmpi ne, %17, %c0_i32_15 : i32
    scf.if %18 {
      %c0_16 = arith.constant 0 : index
      %c0_17 = arith.constant 0 : index
      %19 = vector.load %arg11[%c0_16, %c0_17] : memref<8x128xf32, #tpu.memory_space<vmem>>, vector<8x128xf32>
      %c0_18 = arith.constant 0 : index
      %c0_19 = arith.constant 0 : index
      %20 = vector.load %arg8[%c0_18, %c0_19] : memref<1x128xf32, #tpu.memory_space<vmem>>, vector<1x128xf32>
      %21 = vector.broadcast %20 : vector<1x128xf32> to vector<8x128xf32>
      %22 = arith.addf %19, %21 : vector<8x128xf32>
      %c0_20 = arith.constant 0 : index
      %c0_21 = arith.constant 0 : index
      %23 = vector.load %arg9[%c0_20, %c0_21] : memref<8x128xf32, #tpu.memory_space<vmem>>, vector<8x128xf32>
      tpu.vector_store %arg9[%c0_20, %c0_21], %22 {strides = array<i32>} : memref<8x128xf32, #tpu.memory_space<vmem>>, vector<8x128xf32>,
    } else {
    }
    return
  }
  func.func @transform_0(%arg0: i32, %arg1: i32) -> (i32, i32) {
    %c0_i32 = arith.constant 0 : i32
    %c0_i32_0 = arith.constant 0 : i32
    return %arg0, %c0_i32 : i32, i32
  }
  func.func @transform_1(%arg0: i32, %arg1: i32) -> (i32, i32) {
    %c0_i32 = arith.constant 0 : i32
    %c0_i32_0 = arith.constant 0 : i32
    %c0_i32_1 = arith.constant 0 : i32
    return %c0_i32, %c0_i32_0 : i32, i32
  }
  func.func @transform_2(%arg0: i32, %arg1: i32) -> (i32, i32) {
    %c0_i32 = arith.constant 0 : i32
    %c0_i32_0 = arith.constant 0 : i32
    %c0_i32_1 = arith.constant 0 : i32
    return %c0_i32, %c0_i32_0 : i32, i32
  }
  func.func @transform_3(%arg0: i32, %arg1: i32) -> (i32, i32) {
    %c0_i32 = arith.constant 0 : i32
    %c0_i32_0 = arith.constant 0 : i32
    return %c0_i32, %arg1 : i32, i32
  }
  func.func @transform_4(%arg0: i32, %arg1: i32) -> (i32, i32) {
    %c0_i32 = arith.constant 0 : i32
    %c0_i32_0 = arith.constant 0 : i32
    return %c0_i32, %arg1 : i32, i32
  }
  func.func @transform_5(%arg0: i32, %arg1: i32) -> (i32, i32) {
    %c0_i32 = arith.constant 0 : i32
    %c0_i32_0 = arith.constant 0 : i32
    return %arg1, %c0_i32 : i32, i32
  }
  func.func @transform_6(%arg0: i32, %arg1: i32) -> (i32, i32) {
    %c0_i32 = arith.constant 0 : i32
    %c0_i32_0 = arith.constant 0 : i32
    %c0_i32_1 = arith.constant 0 : i32
    return %c0_i32, %c0_i32_0 : i32, i32
  }
  func.func @transform_7(%arg0: i32, %arg1: i32) -> (i32, i32) {
    %c0_i32 = arith.constant 0 : i32
    %c0_i32_0 = arith.constant 0 : i32
    return %arg0, %c0_i32 : i32, i32
  }
}

module attributes {stable_mosaic.version = 11 : i64} {
  func.func @_ffn_kernel(%arg0: i32, %arg1: i32, %arg2: memref<8x128xf32, #tpu.memory_space<vmem>>, %arg3: memref<1x128xf32, #tpu.memory_space<vmem>>, %arg4: memref<1x128xf32, #tpu.memory_space<vmem>>, %arg5: memref<128x128xf32, #tpu.memory_space<vmem>>, %arg6: memref<1x128xf32, #tpu.memory_space<vmem>>, %arg7: memref<128x128xf32, #tpu.memory_space<vmem>>, %arg8: memref<1x128xf32, #tpu.memory_space<vmem>>, %arg9: memref<8x128xf32, #tpu.memory_space<vmem>>, %arg10: memref<8x128xf32, #tpu.memory_space<vmem>>, %arg11: memref<8x128xf32, #tpu.memory_space<vmem>>) attributes {dimension_semantics = [#tpu.dimension_semantics<parallel>, #tpu.dimension_semantics<arbitrary>], iteration_bounds = array<i64: 2, 1>, scalar_prefetch = 0 : i64, scratch_operands = 2 : i64, tpu.core_type = #tpu.core_type<tc>, window_params = [{transform_indices = @transform_0, window_bounds = array<i64: 8, 128>}, {pipeline_mode = #tpu.pipeline_mode<synchronous>, transform_indices = @transform_1, window_bounds = array<i64: 1, 128>}, {pipeline_mode = #tpu.pipeline_mode<synchronous>, transform_indices = @transform_2, window_bounds = array<i64: 1, 128>}, {transform_indices = @transform_3, window_bounds = array<i64: 128, 128>}, {transform_indices = @transform_4, window_bounds = array<i64: 1, 128>}, {transform_indices = @transform_5, window_bounds = array<i64: 128, 128>}, {pipeline_mode = #tpu.pipeline_mode<synchronous>, transform_indices = @transform_6, window_bounds = array<i64: 1, 128>}, {transform_indices = @transform_7, window_bounds = array<i64: 8, 128>}]} {
    %c0_i32 = arith.constant 0 : i32
    %0 = arith.cmpi eq, %arg1, %c0_i32 : i32
    %1 = arith.extui %0 : i1 to i32
    %c0_i32_0 = arith.constant 0 : i32
    %2 = arith.cmpi ne, %1, %c0_i32_0 : i32
    scf.if %2 {
      %c0_16 = arith.constant 0 : index
      %c0_17 = arith.constant 0 : index
      %19 = vector.load %arg2[%c0_16, %c0_17] : memref<8x128xf32, #tpu.memory_space<vmem>>, vector<8x128xf32>
      %cst_18 = arith.constant dense<0.000000e+00> : vector<8xf32>
      %20 = vector.multi_reduction <add>, %19, %cst_18 [1] : vector<8x128xf32> to vector<8xf32>
      %21 = vector.shape_cast %20 : vector<8xf32> to vector<8x1xf32>
      %22 = arith.mulf %19, %19 : vector<8x128xf32>
      %cst_19 = arith.constant dense<0.000000e+00> : vector<8xf32>
      %23 = vector.multi_reduction <add>, %22, %cst_19 [1] : vector<8x128xf32> to vector<8xf32>
      %24 = vector.shape_cast %23 : vector<8xf32> to vector<8x1xf32>
      %cst_20 = arith.constant 3.125000e-02 : f32
      %25 = vector.broadcast %cst_20 : f32 to vector<8x1xf32>
      %26 = arith.mulf %21, %25 : vector<8x1xf32>
      %cst_21 = arith.constant 3.125000e-02 : f32
      %27 = vector.broadcast %cst_21 : f32 to vector<8x1xf32>
      %28 = arith.mulf %24, %27 : vector<8x1xf32>
      %29 = arith.mulf %26, %26 : vector<8x1xf32>
      %30 = arith.subf %28, %29 : vector<8x1xf32>
      %cst_22 = arith.constant 0.000000e+00 : f32
      %31 = vector.broadcast %cst_22 : f32 to vector<8x1xf32>
      %32 = arith.maximumf %30, %31 : vector<8x1xf32>
      %33 = vector.broadcast %26 : vector<8x1xf32> to vector<8x128xf32>
      %34 = arith.subf %19, %33 : vector<8x128xf32>
      %cst_23 = arith.constant 9.99999974E-6 : f32
      %35 = vector.broadcast %cst_23 : f32 to vector<8x1xf32>
      %36 = arith.addf %32, %35 : vector<8x1xf32>
      %37 = math.rsqrt %36 : vector<8x1xf32>
      %38 = vector.broadcast %37 : vector<8x1xf32> to vector<8x128xf32>
      %39 = arith.mulf %34, %38 : vector<8x128xf32>
      %c0_24 = arith.constant 0 : index
      %c0_25 = arith.constant 0 : index
      %40 = vector.load %arg3[%c0_24, %c0_25] : memref<1x128xf32, #tpu.memory_space<vmem>>, vector<1x128xf32>
      %41 = vector.broadcast %40 : vector<1x128xf32> to vector<8x128xf32>
      %42 = arith.mulf %39, %41 : vector<8x128xf32>
      %c0_26 = arith.constant 0 : index
      %c0_27 = arith.constant 0 : index
      %43 = vector.load %arg4[%c0_26, %c0_27] : memref<1x128xf32, #tpu.memory_space<vmem>>, vector<1x128xf32>
      %44 = vector.broadcast %43 : vector<1x128xf32> to vector<8x128xf32>
      %45 = arith.addf %42, %44 : vector<8x128xf32>
      %c0_28 = arith.constant 0 : index
      %c0_29 = arith.constant 0 : index
      %46 = vector.load %arg10[%c0_28, %c0_29] : memref<8x128xf32, #tpu.memory_space<vmem>>, vector<8x128xf32>
      tpu.vector_store %arg10[%c0_28, %c0_29], %45 {strides = array<i32>} : memref<8x128xf32, #tpu.memory_space<vmem>>, vector<8x128xf32>,
      %cst_30 = arith.constant 0.000000e+00 : f32
      %47 = vector.broadcast %cst_30 : f32 to vector<8x128xf32>
      %c0_31 = arith.constant 0 : index
      %c0_32 = arith.constant 0 : index
      %48 = vector.load %arg11[%c0_31, %c0_32] : memref<8x128xf32, #tpu.memory_space<vmem>>, vector<8x128xf32>
      tpu.vector_store %arg11[%c0_31, %c0_32], %47 {strides = array<i32>} : memref<8x128xf32, #tpu.memory_space<vmem>>, vector<8x128xf32>,
    } else {
    }
    %c0 = arith.constant 0 : index
    %c0_1 = arith.constant 0 : index
    %3 = vector.load %arg10[%c0, %c0_1] : memref<8x128xf32, #tpu.memory_space<vmem>>, vector<8x128xf32>
    %c0_2 = arith.constant 0 : index
    %c0_3 = arith.constant 0 : index
    %4 = vector.load %arg5[%c0_2, %c0_3] : memref<128x128xf32, #tpu.memory_space<vmem>>, vector<128x128xf32>
    %cst = arith.constant dense<0.000000e+00> : vector<8x128xf32>
    %5 = tpu.matmul %3, %4, %cst {dimension_numbers = #tpu.dot_dimension_numbers<[1], [0], [0], [1], [0, 0, 1, 1], [], []>} : vector<8x128xf32>, vector<128x128xf32>, vector<8x128xf32> -> vector<8x128xf32>
    %c0_4 = arith.constant 0 : index
    %c0_5 = arith.constant 0 : index
    %6 = vector.load %arg6[%c0_4, %c0_5] : memref<1x128xf32, #tpu.memory_space<vmem>>, vector<1x128xf32>
    %7 = vector.broadcast %6 : vector<1x128xf32> to vector<8x128xf32>
    %8 = arith.addf %5, %7 : vector<8x128xf32>
    %cst_6 = arith.constant 0.000000e+00 : f32
    %9 = vector.broadcast %cst_6 : f32 to vector<8x128xf32>
    %10 = arith.maximumf %8, %9 : vector<8x128xf32>
    %c0_7 = arith.constant 0 : index
    %c0_8 = arith.constant 0 : index
    %11 = vector.load %arg11[%c0_7, %c0_8] : memref<8x128xf32, #tpu.memory_space<vmem>>, vector<8x128xf32>
    %c0_9 = arith.constant 0 : index
    %c0_10 = arith.constant 0 : index
    %12 = vector.load %arg7[%c0_9, %c0_10] : memref<128x128xf32, #tpu.memory_space<vmem>>, vector<128x128xf32>
    %cst_11 = arith.constant dense<0.000000e+00> : vector<8x128xf32>
    %13 = tpu.matmul %10, %12, %cst_11 {dimension_numbers = #tpu.dot_dimension_numbers<[1], [0], [0], [1], [0, 0, 1, 1], [], []>} : vector<8x128xf32>, vector<128x128xf32>, vector<8x128xf32> -> vector<8x128xf32>
    %14 = arith.addf %11, %13 : vector<8x128xf32>
    %c0_12 = arith.constant 0 : index
    %c0_13 = arith.constant 0 : index
    %15 = vector.load %arg11[%c0_12, %c0_13] : memref<8x128xf32, #tpu.memory_space<vmem>>, vector<8x128xf32>
    tpu.vector_store %arg11[%c0_12, %c0_13], %14 {strides = array<i32>} : memref<8x128xf32, #tpu.memory_space<vmem>>, vector<8x128xf32>,
    %c0_i32_14 = arith.constant 0 : i32
    %16 = arith.cmpi eq, %arg1, %c0_i32_14 : i32
    %17 = arith.extui %16 : i1 to i32
    %c0_i32_15 = arith.constant 0 : i32
    %18 = arith.cmpi ne, %17, %c0_i32_15 : i32
    scf.if %18 {
      %c0_16 = arith.constant 0 : index
      %c0_17 = arith.constant 0 : index
      %19 = vector.load %arg11[%c0_16, %c0_17] : memref<8x128xf32, #tpu.memory_space<vmem>>, vector<8x128xf32>
      %c0_18 = arith.constant 0 : index
      %c0_19 = arith.constant 0 : index
      %20 = vector.load %arg8[%c0_18, %c0_19] : memref<1x128xf32, #tpu.memory_space<vmem>>, vector<1x128xf32>
      %21 = vector.broadcast %20 : vector<1x128xf32> to vector<8x128xf32>
      %22 = arith.addf %19, %21 : vector<8x128xf32>
      %c0_20 = arith.constant 0 : index
      %c0_21 = arith.constant 0 : index
      %23 = vector.load %arg9[%c0_20, %c0_21] : memref<8x128xf32, #tpu.memory_space<vmem>>, vector<8x128xf32>
      tpu.vector_store %arg9[%c0_20, %c0_21], %22 {strides = array<i32>} : memref<8x128xf32, #tpu.memory_space<vmem>>, vector<8x128xf32>,
    } else {
    }
    return
  }
  func.func @transform_0(%arg0: i32, %arg1: i32) -> (i32, i32) {
    %c0_i32 = arith.constant 0 : i32
    %c0_i32_0 = arith.constant 0 : i32
    return %arg0, %c0_i32 : i32, i32
  }
  func.func @transform_1(%arg0: i32, %arg1: i32) -> (i32, i32) {
    %c0_i32 = arith.constant 0 : i32
    %c0_i32_0 = arith.constant 0 : i32
    %c0_i32_1 = arith.constant 0 : i32
    return %c0_i32, %c0_i32_0 : i32, i32
  }
  func.func @transform_2(%arg0: i32, %arg1: i32) -> (i32, i32) {
    %c0_i32 = arith.constant 0 : i32
    %c0_i32_0 = arith.constant 0 : i32
    %c0_i32_1 = arith.constant 0 : i32
    return %c0_i32, %c0_i32_0 : i32, i32
  }
  func.func @transform_3(%arg0: i32, %arg1: i32) -> (i32, i32) {
    %c0_i32 = arith.constant 0 : i32
    %c0_i32_0 = arith.constant 0 : i32
    return %c0_i32, %arg1 : i32, i32
  }
  func.func @transform_4(%arg0: i32, %arg1: i32) -> (i32, i32) {
    %c0_i32 = arith.constant 0 : i32
    %c0_i32_0 = arith.constant 0 : i32
    return %c0_i32, %arg1 : i32, i32
  }
  func.func @transform_5(%arg0: i32, %arg1: i32) -> (i32, i32) {
    %c0_i32 = arith.constant 0 : i32
    %c0_i32_0 = arith.constant 0 : i32
    return %arg1, %c0_i32 : i32, i32
  }
  func.func @transform_6(%arg0: i32, %arg1: i32) -> (i32, i32) {
    %c0_i32 = arith.constant 0 : i32
    %c0_i32_0 = arith.constant 0 : i32
    %c0_i32_1 = arith.constant 0 : i32
    return %c0_i32, %c0_i32_0 : i32, i32
  }
  func.func @transform_7(%arg0: i32, %arg1: i32) -> (i32, i32) {
    %c0_i32 = arith.constant 0 : i32
    %c0_i32_0 = arith.constant 0 : i32
    return %arg0, %c0_i32 : i32, i32
  }
}

</mosaic_0001>

<bundles_post_ra>
// kernel: tpu_custom_call.1
= control target key start
LH: loop header
LB: loop body
LE: loop exit
PB: predicated region body
PF: predicated region fallthrough
CT: control target
= control target key end

     0   :  { %12 = vsyncpa [#allocation5], 0  ;;  %s1501_s0 = inlined_call_operand.hbm [shape: f32[16,128], index: 0, kind: input, shape index: {}]   ;;  %s1502_s1 = inlined_call_operand.vmem [shape: f32[1,128], index: 1, kind: input, shape index: {}]   ;;  %s1503_s2 = inlined_call_operand.vmem [shape: f32[1,128], index: 2, kind: input, shape index: {}]   ;;  %s1504_s3 = inlined_call_operand.hbm [shape: f32[128,128], index: 3, kind: input, shape index: {}]   ;;  %s1505_s4 = inlined_call_operand.vmem [shape: f32[1,128], index: 4, kind: input, shape index: {}]   ;;  %s1506_s5 = inlined_call_operand.hbm [shape: f32[128,128], index: 5, kind: input, shape index: {}]   ;;  %s1507_s6 = inlined_call_operand.vmem [shape: f32[1,128], index: 6, kind: input, shape index: {}]   ;;  %s1508_s7 = inlined_call_operand.hbm [shape: f32[16,128], index: 7, kind: output, shape index: {}]  }
   0x1   :  { %14 = vsyncpa [#allocation5 + $0x1], 0 }
   0x2   :  { %15 = vsyncpa [#allocation8], 0 }
   0x3   :  { %16 = vsyncpa [#allocation6], 0 }
   0x4   :  { %18 = vsyncpa [#allocation6 + $0x1], 0  ;;  %s1213_s24 = smov 0   ;;  %s1215_s25 = smov 0  }
   0x5   :  { %s1217_s26 = smov 0   ;;  %s1219_s27 = smov 0  }
   0x6   :  { %s1221_s28 = smov 0   ;;  %s1223_s29 = smov 0  }
   0x7 LB: > { %1515 = sst [smem:[#allocation14_spill]] %s1142_s24  ;;  %s726_s30 = sadd.s32 4294967295, %s1162_s29   ;;  %s1162_s29 = sphi %s1223_s29, %s24_s29   ;;  %s1158_s28 = sphi %s1221_s28, %s1536_s28   ;;  %s1154_s27 = sphi %s1219_s27, %s1535_s27   ;;  %s1150_s26 = sphi %s1217_s26, %s1534_s26   ;;  %s1146_s25 = sphi %s1215_s25, %s1533_s25   ;;  %s1142_s24 = sphi %s1213_s24, %s1532_s24  }
   0x8   : > { %s727_s8 = sadd.s32 4294967294, %s1162_s29   ;;  %p56_p0 = scmp.ne.s32.totalorder %s1146_s25, %s1142_s24 }
   0x9   : > { %p1247_p1 = scmp.eq.s32.totalorder %s726_s30, 0  ;;  %p1251_p2 = scmp.eq.s32.totalorder %s726_s30, 1 }
   0xa   : > { %p227_p3 = scmp.eq.s32.totalorder %s727_s8, 1  ;;  %p728_p5 = scmp.ge.s32.totalorder %s1162_s29, 1 }
   0xb   : > { %s1516_s9 = scalar_select %p1247_p1, 1, 0 }
   0xc   : > { %p1257_p4 = por %p1247_p1, %p56_p0  ;;  %p1262_p6 = por %p227_p3, %p56_p0 }
   0xd   : > { %p234_p7 = scmp.lt.s32.totalorder %s1162_s29, 3  ;;  %s1164_s14 = smov [#allocation7]  }
   0xe   : > { %s1518_s11 = scalar_select %p1257_p4, 1, 0 }
   0xf   : > { %s1519_s12 = scalar_select %p1262_p6, 1, 0 }
  0x10   : > { %p1267_p8 = pnand %p728_p5, %p234_p7  ;;  %s254_s15 = sshll.u32 %s1164_s14, 4  ;;  %s1271_s15 = int_to_ptr.vmem [resolvable:$true] %s254_s15 }
  0x11   : > { %1520 = sst [smem:[#allocation15_spill]] %s1519_s12  ;;  %s1165_s17 = smov [#allocation9]  }
  0x12   : > { %p912_p9 = pneg %p1267_p8  ;;  %s276_s18 = sshll.u32 %s1165_s17, 4  ;;  %s1282_s18 = int_to_ptr.vmem [resolvable:$true] %s276_s18 }
  0x13   : > { %s990_s21 = scalar_lea.hbm %s1504_s3, 2048 }
  0x14   : > { %p1278_p11 = pnand %p912_p9, %p1247_p1  ;;  %p991_p12 = scmp.ne.s32.totalorder %s1504_s3, %s990_s21 }
  0x15   : > { %p997_p5 = scmp.lt.u32.totalorder %s990_s21, %s1504_s3 }
  0x16   : > { %p992_p13 = pneg %p1278_p11 }
  0x18   : > { %p993_p0 = pnand %p992_p13, %p991_p12 }
  0x1a   : > { %p994_p3 = pneg %p993_p0 }
  0x1c   : > { %p999_p7 = pnand %p997_p5, %p994_p3 }
  0x1e   : > { %1002 = shalt.err (!%p999_p7)
}
  0x1f   : > { %s1003_s14 = scalar_lea.vmem %s1271_s15, 2048  ;;  %p1011_p1 = scmp.lt.s32.totalorder %s1271_s15, %s1271_s15 }
  0x20   : > { %p1004_p9 = scmp.ne.s32.totalorder %s1271_s15, %s1003_s14  ;;  %p1012_p12 = scmp.lt.s32.totalorder %s1003_s14, %s1003_s14 }
  0x22   : > { %p1006_p10 = pnand %p1004_p9, %p992_p13  ;;  %p1013_p0 = por %p1012_p12, %p1011_p1 }
  0x24   : > { %p1007_p6 = pneg %p1006_p10 }
  0x26   : > { %p1014_p4 = pnand %p1013_p0, %p1007_p6 }
  0x28   : > { %1017 = shalt.err (!%p1014_p4)
}
  0x29   : > { %s1166_s17 = smov 128   ;;  %s1167_s19 = smov 8  }
  0x2a   : > { %915 = dma.hbm_to_vmem [thread:$0]  (!%p1278_p11), %s1504_s3, 2048, %s1271_s15, [#allocation8], %s1166_s17, %s1166_s17, %s1167_s19  }
  0x2b   : > { %s1018_s30 = scalar_lea.hbm %s1506_s5, 2048 }
  0x2c   : > { %p1019_p1 = scmp.ne.s32.totalorder %s1506_s5, %s1018_s30  ;;  %p1025_p10 = scmp.lt.u32.totalorder %s1018_s30, %s1506_s5 }
  0x2e   : > { %p1021_p4 = pnand %p1019_p1, %p992_p13 }
  0x30   : > { %p1022_p6 = pneg %p1021_p4 }
  0x32   : > { %p1027_p3 = pnand %p1025_p10, %p1022_p6 }
  0x34   : > { %1030 = shalt.err (!%p1027_p3)
}
  0x35   : > { %s1031_s15 = scalar_lea.vmem %s1282_s18, 2048  ;;  %p1039_p12 = scmp.lt.s32.totalorder %s1282_s18, %s1282_s18 }
  0x36   : > { %p1032_p5 = scmp.ne.s32.totalorder %s1282_s18, %s1031_s15  ;;  %p1040_p0 = scmp.lt.s32.totalorder %s1031_s15, %s1031_s15 }
  0x38   : > { %p1034_p7 = pnand %p1032_p5, %p992_p13  ;;  %p1041_p1 = por %p1040_p0, %p1039_p12 }
  0x3a   : > { %p1035_p9 = pneg %p1034_p7 }
  0x3c   : > { %p1042_p4 = pnand %p1041_p1, %p1035_p9 }
  0x3e   : > { %1045 = shalt.err (!%p1042_p4)
}
  0x3f   : > { %918 = dma.hbm_to_vmem [thread:$0]  (!%p1278_p11), %s1506_s5, 2048, %s1282_s18, [#allocation8], %s1166_s17, %s1166_s17, %s1167_s19  }
  0x40   : > { %s36_s20 = sadd.s32 1, %s1158_s28  ;;  %s43_s21 = sadd.s32 1, %s1150_s26 }
  0x41   : > { %p38_p13 = scmp.ge.s32.totalorder %s36_s20, 2  ;;  %p50_p6 = scmp.ne.s32.totalorder %s1150_s26, %s1146_s25 }
  0x42   : > { %p51_p10 = scmp.eq.s32.totalorder %s1162_s29, 0  ;;  %p929_p3 = scmp.lt.s32.totalorder %s1162_s29, 2 }
  0x43   : > { %s1538_s20 = smov (%p38_p13, %s36_s20), 0  ;;  %p1346_p7 = por %p1251_p2, %p50_p6 }
  0x44   : > { %p52_p5 = por %p51_p10, %p50_p6  ;;  %s40_s22 = ssub.s32 %s1158_s28, %s1538_s20 }
  0x45   : > { %s1523_s16 = scalar_select %p1346_p7, 1, 0 }
  0x46   : > { %s293_s23 = sand.u32 1, %s1150_s26   ;;  %p41_p9 = scmp.eq.s32.totalorder %s40_s22, 0 }
  0x47   : > { %s733_s18 = sshll.u32 %s293_s23, 3  ;;  %s734_s17 = sshll.u32 %s1158_s28, 7 }
  0x48   : > { %s1355_s19 = scalar_select %p41_p9, %s1150_s26, %s43_s21  }
  0x49   : > { %s1360_s14 = scalar_lea.hbm %s1501_s0, %s734_s17  ;;  %s297_s10 = scalar_lea.vmem [#allocation4], %s733_s18 }
  0x4a   : > { %s304_s15 = sshll.u32 %s297_s10, 4  ;;  %p1364_p2 = pnand %p929_p3, %p52_p5  ;;  %s1368_s15 = int_to_ptr.vmem [resolvable:$true] %s304_s15 }
  0x4b   : > { %s294_s12 = scalar_lea.sflag [#allocation5], %s293_s23  ;;  %s1046_s21 = scalar_lea.hbm %s1360_s14, 128 }
  0x4c   : > { %p1047_p11 = scmp.ne.s32.totalorder %s1360_s14, %s1046_s21  ;;  %p1048_p12 = pneg %p1364_p2 }
  0x4d   : > { %s1051_s17 = scalar_lea.hbm %s1501_s0, 256  ;;  %p1052_p4 = scmp.lt.u32.totalorder %s1360_s14, %s1501_s0 }
  0x4e   : > { %p1049_p0 = pnand %p1048_p12, %p1047_p11  ;;  %p1053_p13 = scmp.lt.u32.totalorder %s1051_s17, %s1046_s21 }
  0x4f   : > { %p1055_p10 = scmp.lt.u32.totalorder %s1046_s21, %s1360_s14 }
  0x50   : > { %p1050_p1 = pneg %p1049_p0  ;;  %p1054_p6 = por %p1053_p13, %p1052_p4 }
  0x52   : > { %p1056_p3 = por %p1055_p10, %p1054_p6 }
  0x54   : > { %p1057_p5 = pnand %p1056_p3, %p1050_p1 }
  0x56   : > { %1060 = shalt.err (!%p1057_p5)
}
  0x57   : > { %s1061_s23 = scalar_lea.vmem %s1368_s15, 128  ;;  %s1168_s10 = smov [#allocation4]  }
  0x58   : > { %p1062_p9 = scmp.ne.s32.totalorder %s1368_s15, %s1061_s23  ;;  %s1066_s22 = sshll.u32 %s1168_s10, 4  ;;  %s1067_s22 = int_to_ptr.vmem [resolvable:$false] %s1066_s22 }
  0x59   : > { %s1068_s18 = scalar_lea.vmem %s1067_s22, 256  ;;  %p1069_p7 = scmp.lt.s32.totalorder %s1368_s15, %s1067_s22 }
  0x5a   : > { %p1064_p11 = pnand %p1062_p9, %p1048_p12  ;;  %p1070_p4 = scmp.lt.s32.totalorder %s1068_s18, %s1061_s23 }
  0x5c   : > { %p1065_p0 = pneg %p1064_p11  ;;  %p1071_p13 = por %p1070_p4, %p1069_p7 }
  0x5e   : > { %p1072_p6 = pnand %p1071_p13, %p1065_p0 }
  0x60   : > { %1075 = shalt.err (!%p1072_p6)
}
  0x61   : > { %922 = dma.hbm_to_vmem [thread:$0]  (!%p1364_p2), %s1360_s14, 128, %s1368_s15, %s294_s12  }
  0x62   : > { %313 = sbr.rel (%p1267_p8) target bundleno = 726 (0x2d6), region = 48  ;;  %s1398_s21 = sand.u32 (!%p1267_p8), 1, %s1146_s25  }
  0x63   : > { %s736_s17 = sshll.u32 (!%p1267_p8), %s1398_s21, 3  ;;  %s316_s30 = scalar_lea.sflag (!%p1267_p8), [#allocation5], %s1398_s21 }
  0x64   : > { %s319_s8 = scalar_lea.vmem (!%p1267_p8), [#allocation4], %s736_s17  ;;  %p1525_p7 = scmp.ne.s32.totalorder (!%p1267_p8), %s1518_s11, 0 }
  0x69   : > { %1129 = dma.done.wait (%p1525_p7), %s316_s30, 128  }
  0x6a   : > { %1131 = vsyncadd (%p1525_p7), %s316_s30, 4294967168  ;;  %p1526_p2 = scmp.ne.s32.totalorder %s1516_s9, 0 }
  0x6c   : > { %1133 = dma.done.wait (%p1526_p2), [#allocation8], 4096  }
  0x6d   : > { %1135 = vsyncadd (%p1526_p2), [#allocation8], 4294963200  ;;  %v1169_v0 = vmov 0.0|0.0   ;;  %v1414_v1 = vld [vmem:[%s319_s8] sm:$0xff]  ;;  %v403_v2 = vld [vmem:[#allocation7] sm:$0xff]  ;;  %vm1170_vm0 = vmmov 0  }
  0x6e   : > { %852 = vmatprep.subr.bf16.mxu0 %v1169_v0  ;;  %876 = vmatprep.subr.bf16.mxu1 %v1169_v0  ;;  %v404_v3 = vld [vmem:[#allocation7 + $0x8] sm:$0xff]  ;;  %v372_v4 = vmul.f32 %v1414_v1, %v1414_v1  ;;  %v405_v6 = vld [vmem:[#allocation7 + $0x10] sm:$0xff]  ;;  %v406_v7 = vld [vmem:[#allocation7 + $0x18] sm:$0xff]  ;;  %v1171_v20 = vmov 0.0   ;;  %s745_s10 = sshll.u32 %s1154_s27, 7  ;;  %s360_s22 = scalar_lea.vmem [#allocation10], %s736_s17 }
  0x6f   : > { %370 = vadd.xlane.f32.xlu0 %v1414_v1  ;;  %v853_v5 = vpack.c.bf16 %v404_v3, %v403_v2  ;;  %v856_v8 = vpack.c.bf16 %v406_v7, %v405_v6  ;;  %v407_v9 = vld [vmem:[#allocation7 + $0x20] sm:$0xff]  ;;  %v408_v10 = vld [vmem:[#allocation7 + $0x28] sm:$0xff]  ;;  %v409_v12 = vld [vmem:[#allocation7 + $0x30] sm:$0xff]  ;;  %814 = vmatprep.mubr.msk.f32.mxu0 %vm1170_vm0, %v1171_v20  ;;  %s613_s18 = sshll.u32 %s360_s22, 4  ;;  %s1452_s9 = scalar_lea.hbm %s1508_s7, %s745_s10  ;;  %s1454_s18 = int_to_ptr.vmem [resolvable:$true] %s613_s18 }
  0x70   : > { %v859_v11 = vpack.c.bf16 %v408_v10, %v407_v9  ;;  %v410_v13 = vld [vmem:[#allocation7 + $0x38] sm:$0xff]  ;;  %v411_v15 = vld [vmem:[#allocation7 + $0x40] sm:$0xff]  ;;  %v412_v16 = vld [vmem:[#allocation7 + $0x48] sm:$0xff]  ;;  %849 = vmatprep.mubr.msk.f32.mxu1 %vm1170_vm0, %v1171_v20  ;;  %s600_s11 = scalar_lea.sflag [#allocation6], %s1398_s21  ;;  %s1076_s13 = scalar_lea.vmem %s1454_s18, 128 }
  0x71   : > { %854 = vmatpush3.bf16.msra.mxu0 %v853_v5  ;;  %v862_v14 = vpack.c.bf16 %v410_v13, %v409_v12  ;;  %v865_v17 = vpack.c.bf16 %v412_v16, %v411_v15  ;;  %v413_v18 = vld [vmem:[#allocation7 + $0x50] sm:$0xff]  ;;  %v414_v19 = vld [vmem:[#allocation7 + $0x58] sm:$0xff]  ;;  %v415_v22 = vld [vmem:[#allocation7 + $0x60] sm:$0xff]  ;;  %p1077_p8 = scmp.ne.s32.totalorder %s1454_s18, %s1076_s13  ;;  %p1527_p12 = scmp.ne.s32.totalorder %s1523_s16, 0 }
  0x72   : > { %855 = vmatprep.subr.bf16.mxu0 %v1169_v0  ;;  %v868_v21 = vpack.c.bf16 %v414_v19, %v413_v18  ;;  %v416_v23 = vld [vmem:[#allocation7 + $0x68] sm:$0xff]  ;;  %v417_v25 = vld [vmem:[#allocation7 + $0x70] sm:$0xff]  ;;  %v418_v26 = vld [vmem:[#allocation7 + $0x78] sm:$0xff]  ;;  %s1172_s27 = smov [#allocation10]  }
  0x73   : > { %373 = vadd.xlane.f32.xlu0 %v372_v4  ;;  %v871_v24 = vpack.c.bf16 %v416_v23, %v415_v22  ;;  %v874_v27 = vpack.c.bf16 %v418_v26, %v417_v25  ;;  %v498_v28 = vld [vmem:[#allocation9] sm:$0xff]  ;;  %v499_v29 = vld [vmem:[#allocation9 + $0x8] sm:$0xff]  ;;  %v500_v30 = vld [vmem:[#allocation9 + $0x10] sm:$0xff]  ;;  %p1078_p1 = pnand %p1077_p8, %p1527_p12  ;;  %s1080_s17 = sshll.u32 %s1172_s27, 4  ;;  %s1081_s17 = int_to_ptr.vmem [resolvable:$false] %s1080_s17 }
  0x74   : > { %v877_v31 = vpack.c.bf16 %v499_v29, %v498_v28  ;;  %v501_v32 = vld [vmem:[#allocation9 + $0x18] sm:$0xff]  ;;  %v502_v34 = vld [vmem:[#allocation9 + $0x20] sm:$0xff]  ;;  %v503_v35 = vld [vmem:[#allocation9 + $0x28] sm:$0xff]  ;;  %s1082_s14 = scalar_lea.vmem %s1081_s17, 256  ;;  %p1083_p3 = scmp.lt.s32.totalorder %s1454_s18, %s1081_s17 }
  0x75   : > { %857 = vmatpush3.bf16.msra.mxu0 %v856_v8  ;;  %v880_v33 = vpack.c.bf16 %v501_v32, %v500_v30  ;;  %v883_v36 = vpack.c.bf16 %v503_v35, %v502_v34  ;;  %v504_v37 = vld [vmem:[#allocation9 + $0x30] sm:$0xff]  ;;  %v505_v38 = vld [vmem:[#allocation9 + $0x38] sm:$0xff]  ;;  %v506_v40 = vld [vmem:[#allocation9 + $0x40] sm:$0xff]  ;;  %p1079_p10 = pneg %p1078_p1  ;;  %p1084_p5 = scmp.lt.s32.totalorder %s1082_s14, %s1076_s13 }
  0x76   : > { %858 = vmatprep.subr.bf16.mxu0 %v1169_v0  ;;  %878 = vmatpush3.bf16.msra.mxu1 %v877_v31  ;;  %v886_v39 = vpack.c.bf16 %v505_v38, %v504_v37  ;;  %v507_v41 = vld [vmem:[#allocation9 + $0x48] sm:$0xff]  ;;  %v508_v43 = vld [vmem:[#allocation9 + $0x50] sm:$0xff]  ;;  %v509_v44 = vld [vmem:[#allocation9 + $0x58] sm:$0xff] }
  0x77   : > { %879 = vmatprep.subr.bf16.mxu1 %v1169_v0  ;;  %v889_v42 = vpack.c.bf16 %v507_v41, %v506_v40  ;;  %v892_v45 = vpack.c.bf16 %v509_v44, %v508_v43  ;;  %v510_v46 = vld [vmem:[#allocation9 + $0x60] sm:$0xff]  ;;  %v511_v47 = vld [vmem:[#allocation9 + $0x68] sm:$0xff]  ;;  %v740_v59 = vld [vmem:[%s1502_s1] ss:$0 sm:$0xff]  ;;  %p1085_p9 = por %p1084_p5, %p1083_p3 }
  0x78   : > { %v895_v48 = vpack.c.bf16 %v511_v47, %v510_v46  ;;  %v741_v61 = vld [vmem:[%s1503_s2] ss:$0 sm:$0xff]  ;;  %v513_v2 = vld [vmem:[#allocation9 + $0x78] sm:$0xff] }
  0x79   : > { %860 = vmatpush3.bf16.msra.mxu0 %v859_v11  ;;  %v743_v8 = vld [vmem:[%s1507_s6] ss:$0 sm:$0xff]  ;;  %p1086_p11 = pnand %p1085_p9, %p1079_p10 }
  0x7a   : > { %861 = vmatprep.subr.bf16.mxu0 %v1169_v0  ;;  %881 = vmatpush3.bf16.msra.mxu1 %v880_v33 }
  0x7b   : > { %882 = vmatprep.subr.bf16.mxu1 %v1169_v0 }
  0x7d   : > { %863 = vmatpush3.bf16.msra.mxu0 %v862_v14 }
  0x7e   : > { %864 = vmatprep.subr.bf16.mxu0 %v1169_v0  ;;  %884 = vmatpush3.bf16.msra.mxu1 %v883_v36 }
  0x7f   : > { %885 = vmatprep.subr.bf16.mxu1 %v1169_v0 }
  0x81   : > { %866 = vmatpush3.bf16.msra.mxu0 %v865_v17 }
  0x82   : > { %867 = vmatprep.subr.bf16.mxu0 %v1169_v0  ;;  %887 = vmatpush3.bf16.msra.mxu1 %v886_v39 }
  0x83   : > { %888 = vmatprep.subr.bf16.mxu1 %v1169_v0 }
  0x85   : > { %869 = vmatpush3.bf16.msra.mxu0 %v868_v21 }
  0x86   : > { %870 = vmatprep.subr.bf16.mxu0 %v1169_v0  ;;  %890 = vmatpush3.bf16.msra.mxu1 %v889_v42 }
  0x87   : > { %891 = vmatprep.subr.bf16.mxu1 %v1169_v0 }
  0x89   : > { %872 = vmatpush3.bf16.msra.mxu0 %v871_v24 }
  0x8a   : > { %873 = vmatprep.subr.bf16.mxu0 %v1169_v0  ;;  %893 = vmatpush3.bf16.msra.mxu1 %v892_v45 }
  0x8b   : > { %894 = vmatprep.subr.bf16.mxu1 %v1169_v0 }
  0x8d   : > { %875 = vmatpush3.bf16.msra.mxu0 %v874_v27 }
  0x8e   : > { %896 = vmatpush3.bf16.msra.mxu1 %v895_v48 }
  0x8f   : > { %897 = vmatprep.subr.bf16.mxu1 %v1169_v0  ;;  %v512_v0 = vld [vmem:[#allocation9 + $0x70] sm:$0xff] }
  0x90   : > { %v898_v3 = vpack.c.bf16 %v513_v2, %v512_v0 }
  0x92   : > { %899 = vmatpush3.bf16.msra.mxu1 %v898_v3 }
  0xfc   : > { %v371_v49 = vpop.xlane.xlu0 %370 }
  0xfd   : > { %v375_v50 = vmul.f32 0.03125, %v371_v49 }
  0xff   : > { %v377_v52 = vmul.f32 %v375_v50, %v375_v50  ;;  %v380_v57 = vsub.f32 %v1414_v1, %v375_v50  ;;  %v742_v1 = vld [vmem:[%s1505_s4] ss:$0 sm:$0xff] }
 0x100   : > { %v374_v51 = vpop.xlane.xlu0 %373 }
 0x101   : > { %v376_v53 = vmul.f32 0.03125, %v374_v51 }
 0x103   : > { %v378_v54 = vsub.f32 %v376_v53, %v377_v52 }
 0x105   : > { %v379_v55 = vmax.f32 %v378_v54, 0.0 }
 0x107   : > { %v381_v56 = vadd.f32 1e-05, %v379_v55 }
 0x109   : > { %988 = vrsqrt.f32 %v381_v56 }
 0x113   : > { %v989_v58 = vpop.eup %988 }
 0x114   : > { %v383_v60 = vmul.f32 %v989_v58, %v380_v57 }
 0x116   : > { %v391_v62 = vmul.f32 %v740_v59, %v383_v60 }
 0x118   : > { %v399_v63 = vadd.f32 %v741_v61, %v391_v62 }
 0x11a   : > { %815 = vmatmul.mubr.f32.vlgmr.msra.gmra.mrb[0].mxu0 %v399_v63 }
 0x1ed   : > { %v492_v4 = vpop.f32.mrb[0].mxu0 }
 0x1ee   : > { %v493_v5 = vadd.f32 %v742_v1, %v492_v4  ;;  %v816_v6 = vpop.f32.mrb[1].mxu0 }
 0x1f0   : > { %v496_v7 = vmax.f32 %v493_v5, 0.0 }
 0x1f2   : > { %850 = vmatmul.mubr.f32.vlgmr.msra.gmra.mrb[0].mxu1 %v496_v7 }
 0x2c5   : > { %v580_v9 = vpop.f32.mrb[0].mxu1 }
 0x2c6   : > { %v597_v10 = vadd.f32 %v743_v8, %v580_v9  ;;  %v851_v11 = vpop.f32.mrb[1].mxu1 }
 0x2c8   : > { %598 = vst [vmem:[%s360_s22] sm:$0xff] %v597_v10 }
 0x2c9   : > { %1089 = shalt.err (!%p1086_p11)
}
 0x2ca   : > { %s1090_s21 = scalar_lea.hbm %s1452_s9, 128  ;;  %s1094_s12 = scalar_lea.hbm %s1508_s7, 256 }
 0x2cb   : > { %p1091_p0 = scmp.ne.s32.totalorder %s1452_s9, %s1090_s21  ;;  %p1095_p6 = scmp.lt.u32.totalorder %s1452_s9, %s1508_s7 }
 0x2cc   : > { %p1096_p7 = scmp.lt.u32.totalorder %s1094_s12, %s1090_s21  ;;  %p1098_p8 = scmp.lt.u32.totalorder %s1090_s21, %s1452_s9 }
 0x2cd   : > { %p1092_p4 = pnand %p1091_p0, %p1527_p12 }
 0x2ce   : > { %p1097_p2 = por %p1096_p7, %p1095_p6 }
 0x2cf   : > { %p1093_p13 = pneg %p1092_p4 }
 0x2d0   : > { %p1099_p1 = por %p1098_p8, %p1097_p2 }
 0x2d2   : > { %p1100_p10 = pnand %p1099_p1, %p1093_p13 }
 0x2d4   : > { %1103 = shalt.err (!%p1100_p10)
}
 0x2d5   : > { %910 = dma.vmem_to_hbm [thread:$0]  (%p1527_p12), %s1454_s18, 128, %s1452_s9, %s600_s11  }
 0x2d6 PF: > { %s1528_s22 = sld [smem:[#allocation14_spill]]  ;;  %s1529_s30 = sld [smem:[#allocation15_spill]] }
 0x2d7   : > { %p1531_p5 = scmp.ge.s32.totalorder %s1162_s29, 2 }
 0x2dc   : > { %s625_s8 = sand.u32 1, %s1528_s22   ;;  %p1530_p3 = scmp.ne.s32.totalorder %s1529_s30, 0 }
 0x2dd   : > { %s626_s13 = scalar_lea.sflag [#allocation6], %s625_s8 }
 0x2de   : > { %p924_p9 = pnand %p1531_p5, %p1530_p3 }
 0x2e0   : > { %1137 = dma.done.wait (!%p924_p9), %s626_s13, 128  }
 0x2e1   : > { %1139 = vsyncadd (!%p924_p9), %s626_s13, 4294967168  ;;  %s24_s29 = sadd.s32 1, %s1162_s29   ;;  %s1532_s24 = smov %s1146_s25 }
 0x2e2   : > { %p21_p11 = scmp.ge.s32.totalorder %s24_s29, 4   ;;  %s1533_s25 = smov %s1150_s26 }
 0x2e3   : > { %s1534_s26 = smov %s1355_s19  ;;  %s1535_s27 = smov %s1158_s28 }
 0x2e4   : > { %s1536_s28 = smov %s1538_s20  ;;  %23 = sbr.rel (!%p21_p11) target bundleno = 7 (0x7), region = 114 }
 0x2eb   :  { %631 = vsyncpa [#allocation5], 1 }
 0x2ec   :  { %633 = vsyncpa [#allocation5 + $0x1], 1 }
 0x2ed   :  { %634 = vsyncpa [#allocation8], 1 }
 0x2ee   :  { %635 = vsyncpa [#allocation6], 1 }
 0x2ef   :  { %637 = vsyncpa [#allocation6 + $0x1], 1 }

// kernel: tpu_custom_call.1
= control target key start
LH: loop header
LB: loop body
LE: loop exit
PB: predicated region body
PF: predicated region fallthrough
CT: control target
= control target key end

     0   :  { %12 = vsyncpa [#allocation5], 0  ;;  %s1501_s0 = inlined_call_operand.hbm [shape: f32[16,128], index: 0, kind: input, shape index: {}]   ;;  %s1502_s1 = inlined_call_operand.vmem [shape: f32[1,128], index: 1, kind: input, shape index: {}]   ;;  %s1503_s2 = inlined_call_operand.vmem [shape: f32[1,128], index: 2, kind: input, shape index: {}]   ;;  %s1504_s3 = inlined_call_operand.hbm [shape: f32[128,128], index: 3, kind: input, shape index: {}]   ;;  %s1505_s4 = inlined_call_operand.vmem [shape: f32[1,128], index: 4, kind: input, shape index: {}]   ;;  %s1506_s5 = inlined_call_operand.hbm [shape: f32[128,128], index: 5, kind: input, shape index: {}]   ;;  %s1507_s6 = inlined_call_operand.vmem [shape: f32[1,128], index: 6, kind: input, shape index: {}]   ;;  %s1508_s7 = inlined_call_operand.hbm [shape: f32[16,128], index: 7, kind: output, shape index: {}]  }
   0x1   :  { %14 = vsyncpa [#allocation5 + $0x1], 0 }
   0x2   :  { %15 = vsyncpa [#allocation8], 0 }
   0x3   :  { %16 = vsyncpa [#allocation6], 0 }
   0x4   :  { %18 = vsyncpa [#allocation6 + $0x1], 0  ;;  %s1213_s24 = smov 0   ;;  %s1215_s25 = smov 0  }
   0x5   :  { %s1217_s26 = smov 0   ;;  %s1219_s27 = smov 0  }
   0x6   :  { %s1221_s28 = smov 0   ;;  %s1223_s29 = smov 0  }
   0x7 LB: > { %1515 = sst [smem:[#allocation14_spill]] %s1142_s24  ;;  %s726_s30 = sadd.s32 4294967295, %s1162_s29   ;;  %s1162_s29 = sphi %s1223_s29, %s24_s29   ;;  %s1158_s28 = sphi %s1221_s28, %s1536_s28   ;;  %s1154_s27 = sphi %s1219_s27, %s1535_s27   ;;  %s1150_s26 = sphi %s1217_s26, %s1534_s26   ;;  %s1146_s25 = sphi %s1215_s25, %s1533_s25   ;;  %s1142_s24 = sphi %s1213_s24, %s1532_s24  }
   0x8   : > { %s727_s8 = sadd.s32 4294967294, %s1162_s29   ;;  %p56_p0 = scmp.ne.s32.totalorder %s1146_s25, %s1142_s24 }
   0x9   : > { %p1247_p1 = scmp.eq.s32.totalorder %s726_s30, 0  ;;  %p1251_p2 = scmp.eq.s32.totalorder %s726_s30, 1 }
   0xa   : > { %p227_p3 = scmp.eq.s32.totalorder %s727_s8, 1  ;;  %p728_p5 = scmp.ge.s32.totalorder %s1162_s29, 1 }
   0xb   : > { %s1516_s9 = scalar_select %p1247_p1, 1, 0 }
   0xc   : > { %p1257_p4 = por %p1247_p1, %p56_p0  ;;  %p1262_p6 = por %p227_p3, %p56_p0 }
   0xd   : > { %p234_p7 = scmp.lt.s32.totalorder %s1162_s29, 3  ;;  %s1164_s14 = smov [#allocation7]  }
   0xe   : > { %s1518_s11 = scalar_select %p1257_p4, 1, 0 }
   0xf   : > { %s1519_s12 = scalar_select %p1262_p6, 1, 0 }
  0x10   : > { %p1267_p8 = pnand %p728_p5, %p234_p7  ;;  %s254_s15 = sshll.u32 %s1164_s14, 4  ;;  %s1271_s15 = int_to_ptr.vmem [resolvable:$true] %s254_s15 }
  0x11   : > { %1520 = sst [smem:[#allocation15_spill]] %s1519_s12  ;;  %s1165_s17 = smov [#allocation9]  }
  0x12   : > { %p912_p9 = pneg %p1267_p8  ;;  %s276_s18 = sshll.u32 %s1165_s17, 4  ;;  %s1282_s18 = int_to_ptr.vmem [resolvable:$true] %s276_s18 }
  0x13   : > { %s990_s21 = scalar_lea.hbm %s1504_s3, 2048 }
  0x14   : > { %p1278_p11 = pnand %p912_p9, %p1247_p1  ;;  %p991_p12 = scmp.ne.s32.totalorder %s1504_s3, %s990_s21 }
  0x15   : > { %p997_p5 = scmp.lt.u32.totalorder %s990_s21, %s1504_s3 }
  0x16   : > { %p992_p13 = pneg %p1278_p11 }
  0x18   : > { %p993_p0 = pnand %p992_p13, %p991_p12 }
  0x1a   : > { %p994_p3 = pneg %p993_p0 }
  0x1c   : > { %p999_p7 = pnand %p997_p5, %p994_p3 }
  0x1e   : > { %1002 = shalt.err (!%p999_p7)
}
  0x1f   : > { %s1003_s14 = scalar_lea.vmem %s1271_s15, 2048  ;;  %p1011_p1 = scmp.lt.s32.totalorder %s1271_s15, %s1271_s15 }
  0x20   : > { %p1004_p9 = scmp.ne.s32.totalorder %s1271_s15, %s1003_s14  ;;  %p1012_p12 = scmp.lt.s32.totalorder %s1003_s14, %s1003_s14 }
  0x22   : > { %p1006_p10 = pnand %p1004_p9, %p992_p13  ;;  %p1013_p0 = por %p1012_p12, %p1011_p1 }
  0x24   : > { %p1007_p6 = pneg %p1006_p10 }
  0x26   : > { %p1014_p4 = pnand %p1013_p0, %p1007_p6 }
  0x28   : > { %1017 = shalt.err (!%p1014_p4)
}
  0x29   : > { %s1166_s17 = smov 128   ;;  %s1167_s19 = smov 8  }
  0x2a   : > { %915 = dma.hbm_to_vmem [thread:$0]  (!%p1278_p11), %s1504_s3, 2048, %s1271_s15, [#allocation8], %s1166_s17, %s1166_s17, %s1167_s19  }
  0x2b   : > { %s1018_s30 = scalar_lea.hbm %s1506_s5, 2048 }
  0x2c   : > { %p1019_p1 = scmp.ne.s32.totalorder %s1506_s5, %s1018_s30  ;;  %p1025_p10 = scmp.lt.u32.totalorder %s1018_s30, %s1506_s5 }
  0x2e   : > { %p1021_p4 = pnand %p1019_p1, %p992_p13 }
  0x30   : > { %p1022_p6 = pneg %p1021_p4 }
  0x32   : > { %p1027_p3 = pnand %p1025_p10, %p1022_p6 }
  0x34   : > { %1030 = shalt.err (!%p1027_p3)
}
  0x35   : > { %s1031_s15 = scalar_lea.vmem %s1282_s18, 2048  ;;  %p1039_p12 = scmp.lt.s32.totalorder %s1282_s18, %s1282_s18 }
  0x36   : > { %p1032_p5 = scmp.ne.s32.totalorder %s1282_s18, %s1031_s15  ;;  %p1040_p0 = scmp.lt.s32.totalorder %s1031_s15, %s1031_s15 }
  0x38   : > { %p1034_p7 = pnand %p1032_p5, %p992_p13  ;;  %p1041_p1 = por %p1040_p0, %p1039_p12 }
  0x3a   : > { %p1035_p9 = pneg %p1034_p7 }
  0x3c   : > { %p1042_p4 = pnand %p1041_p1, %p1035_p9 }
  0x3e   : > { %1045 = shalt.err (!%p1042_p4)
}
  0x3f   : > { %918 = dma.hbm_to_vmem [thread:$0]  (!%p1278_p11), %s1506_s5, 2048, %s1282_s18, [#allocation8], %s1166_s17, %s1166_s17, %s1167_s19  }
  0x40   : > { %s36_s20 = sadd.s32 1, %s1158_s28  ;;  %s43_s21 = sadd.s32 1, %s1150_s26 }
  0x41   : > { %p38_p13 = scmp.ge.s32.totalorder %s36_s20, 2  ;;  %p50_p6 = scmp.ne.s32.totalorder %s1150_s26, %s1146_s25 }
  0x42   : > { %p51_p10 = scmp.eq.s32.totalorder %s1162_s29, 0  ;;  %p929_p3 = scmp.lt.s32.totalorder %s1162_s29, 2 }
  0x43   : > { %s1538_s20 = smov (%p38_p13, %s36_s20), 0  ;;  %p1346_p7 = por %p1251_p2, %p50_p6 }
  0x44   : > { %p52_p5 = por %p51_p10, %p50_p6  ;;  %s40_s22 = ssub.s32 %s1158_s28, %s1538_s20 }
  0x45   : > { %s1523_s16 = scalar_select %p1346_p7, 1, 0 }
  0x46   : > { %s293_s23 = sand.u32 1, %s1150_s26   ;;  %p41_p9 = scmp.eq.s32.totalorder %s40_s22, 0 }
  0x47   : > { %s733_s18 = sshll.u32 %s293_s23, 3  ;;  %s734_s17 = sshll.u32 %s1158_s28, 7 }
  0x48   : > { %s1355_s19 = scalar_select %p41_p9, %s1150_s26, %s43_s21  }
  0x49   : > { %s1360_s14 = scalar_lea.hbm %s1501_s0, %s734_s17  ;;  %s297_s10 = scalar_lea.vmem [#allocation4], %s733_s18 }
  0x4a   : > { %s304_s15 = sshll.u32 %s297_s10, 4  ;;  %p1364_p2 = pnand %p929_p3, %p52_p5  ;;  %s1368_s15 = int_to_ptr.vmem [resolvable:$true] %s304_s15 }
  0x4b   : > { %s294_s12 = scalar_lea.sflag [#allocation5], %s293_s23  ;;  %s1046_s21 = scalar_lea.hbm %s1360_s14, 128 }
  0x4c   : > { %p1047_p11 = scmp.ne.s32.totalorder %s1360_s14, %s1046_s21  ;;  %p1048_p12 = pneg %p1364_p2 }
  0x4d   : > { %s1051_s17 = scalar_lea.hbm %s1501_s0, 256  ;;  %p1052_p4 = scmp.lt.u32.totalorder %s1360_s14, %s1501_s0 }
  0x4e   : > { %p1049_p0 = pnand %p1048_p12, %p1047_p11  ;;  %p1053_p13 = scmp.lt.u32.totalorder %s1051_s17, %s1046_s21 }
  0x4f   : > { %p1055_p10 = scmp.lt.u32.totalorder %s1046_s21, %s1360_s14 }
  0x50   : > { %p1050_p1 = pneg %p1049_p0  ;;  %p1054_p6 = por %p1053_p13, %p1052_p4 }
  0x52   : > { %p1056_p3 = por %p1055_p10, %p1054_p6 }
  0x54   : > { %p1057_p5 = pnand %p1056_p3, %p1050_p1 }
  0x56   : > { %1060 = shalt.err (!%p1057_p5)
}
  0x57   : > { %s1061_s23 = scalar_lea.vmem %s1368_s15, 128  ;;  %s1168_s10 = smov [#allocation4]  }
  0x58   : > { %p1062_p9 = scmp.ne.s32.totalorder %s1368_s15, %s1061_s23  ;;  %s1066_s22 = sshll.u32 %s1168_s10, 4  ;;  %s1067_s22 = int_to_ptr.vmem [resolvable:$false] %s1066_s22 }
  0x59   : > { %s1068_s18 = scalar_lea.vmem %s1067_s22, 256  ;;  %p1069_p7 = scmp.lt.s32.totalorder %s1368_s15, %s1067_s22 }
  0x5a   : > { %p1064_p11 = pnand %p1062_p9, %p1048_p12  ;;  %p1070_p4 = scmp.lt.s32.totalorder %s1068_s18, %s1061_s23 }
  0x5c   : > { %p1065_p0 = pneg %p1064_p11  ;;  %p1071_p13 = por %p1070_p4, %p1069_p7 }
  0x5e   : > { %p1072_p6 = pnand %p1071_p13, %p1065_p0 }
  0x60   : > { %1075 = shalt.err (!%p1072_p6)
}
  0x61   : > { %922 = dma.hbm_to_vmem [thread:$0]  (!%p1364_p2), %s1360_s14, 128, %s1368_s15, %s294_s12  }
  0x62   : > { %313 = sbr.rel (%p1267_p8) target bundleno = 726 (0x2d6), region = 48  ;;  %s1398_s21 = sand.u32 (!%p1267_p8), 1, %s1146_s25  }
  0x63   : > { %s736_s17 = sshll.u32 (!%p1267_p8), %s1398_s21, 3  ;;  %s316_s30 = scalar_lea.sflag (!%p1267_p8), [#allocation5], %s1398_s21 }
  0x64   : > { %s319_s8 = scalar_lea.vmem (!%p1267_p8), [#allocation4], %s736_s17  ;;  %p1525_p7 = scmp.ne.s32.totalorder (!%p1267_p8), %s1518_s11, 0 }
  0x69   : > { %1129 = dma.done.wait (%p1525_p7), %s316_s30, 128  }
  0x6a   : > { %1131 = vsyncadd (%p1525_p7), %s316_s30, 4294967168  ;;  %p1526_p2 = scmp.ne.s32.totalorder %s1516_s9, 0 }
  0x6c   : > { %1133 = dma.done.wait (%p1526_p2), [#allocation8], 4096  }
  0x6d   : > { %1135 = vsyncadd (%p1526_p2), [#allocation8], 4294963200  ;;  %v1169_v0 = vmov 0.0|0.0   ;;  %v1414_v1 = vld [vmem:[%s319_s8] sm:$0xff]  ;;  %v403_v2 = vld [vmem:[#allocation7] sm:$0xff]  ;;  %vm1170_vm0 = vmmov 0  }
  0x6e   : > { %852 = vmatprep.subr.bf16.mxu0 %v1169_v0  ;;  %876 = vmatprep.subr.bf16.mxu1 %v1169_v0  ;;  %v404_v3 = vld [vmem:[#allocation7 + $0x8] sm:$0xff]  ;;  %v372_v4 = vmul.f32 %v1414_v1, %v1414_v1  ;;  %v405_v6 = vld [vmem:[#allocation7 + $0x10] sm:$0xff]  ;;  %v406_v7 = vld [vmem:[#allocation7 + $0x18] sm:$0xff]  ;;  %v1171_v20 = vmov 0.0   ;;  %s745_s10 = sshll.u32 %s1154_s27, 7  ;;  %s360_s22 = scalar_lea.vmem [#allocation10], %s736_s17 }
  0x6f   : > { %370 = vadd.xlane.f32.xlu0 %v1414_v1  ;;  %v853_v5 = vpack.c.bf16 %v404_v3, %v403_v2  ;;  %v856_v8 = vpack.c.bf16 %v406_v7, %v405_v6  ;;  %v407_v9 = vld [vmem:[#allocation7 + $0x20] sm:$0xff]  ;;  %v408_v10 = vld [vmem:[#allocation7 + $0x28] sm:$0xff]  ;;  %v409_v12 = vld [vmem:[#allocation7 + $0x30] sm:$0xff]  ;;  %814 = vmatprep.mubr.msk.f32.mxu0 %vm1170_vm0, %v1171_v20  ;;  %s613_s18 = sshll.u32 %s360_s22, 4  ;;  %s1452_s9 = scalar_lea.hbm %s1508_s7, %s745_s10  ;;  %s1454_s18 = int_to_ptr.vmem [resolvable:$true] %s613_s18 }
  0x70   : > { %v859_v11 = vpack.c.bf16 %v408_v10, %v407_v9  ;;  %v410_v13 = vld [vmem:[#allocation7 + $0x38] sm:$0xff]  ;;  %v411_v15 = vld [vmem:[#allocation7 + $0x40] sm:$0xff]  ;;  %v412_v16 = vld [vmem:[#allocation7 + $0x48] sm:$0xff]  ;;  %849 = vmatprep.mubr.msk.f32.mxu1 %vm1170_vm0, %v1171_v20  ;;  %s600_s11 = scalar_lea.sflag [#allocation6], %s1398_s21  ;;  %s1076_s13 = scalar_lea.vmem %s1454_s18, 128 }
  0x71   : > { %854 = vmatpush3.bf16.msra.mxu0 %v853_v5  ;;  %v862_v14 = vpack.c.bf16 %v410_v13, %v409_v12  ;;  %v865_v17 = vpack.c.bf16 %v412_v16, %v411_v15  ;;  %v413_v18 = vld [vmem:[#allocation7 + $0x50] sm:$0xff]  ;;  %v414_v19 = vld [vmem:[#allocation7 + $0x58] sm:$0xff]  ;;  %v415_v22 = vld [vmem:[#allocation7 + $0x60] sm:$0xff]  ;;  %p1077_p8 = scmp.ne.s32.totalorder %s1454_s18, %s1076_s13  ;;  %p1527_p12 = scmp.ne.s32.totalorder %s1523_s16, 0 }
  0x72   : > { %855 = vmatprep.subr.bf16.mxu0 %v1169_v0  ;;  %v868_v21 = vpack.c.bf16 %v414_v19, %v413_v18  ;;  %v416_v23 = vld [vmem:[#allocation7 + $0x68] sm:$0xff]  ;;  %v417_v25 = vld [vmem:[#allocation7 + $0x70] sm:$0xff]  ;;  %v418_v26 = vld [vmem:[#allocation7 + $0x78] sm:$0xff]  ;;  %s1172_s27 = smov [#allocation10]  }
  0x73   : > { %373 = vadd.xlane.f32.xlu0 %v372_v4  ;;  %v871_v24 = vpack.c.bf16 %v416_v23, %v415_v22  ;;  %v874_v27 = vpack.c.bf16 %v418_v26, %v417_v25  ;;  %v498_v28 = vld [vmem:[#allocation9] sm:$0xff]  ;;  %v499_v29 = vld [vmem:[#allocation9 + $0x8] sm:$0xff]  ;;  %v500_v30 = vld [vmem:[#allocation9 + $0x10] sm:$0xff]  ;;  %p1078_p1 = pnand %p1077_p8, %p1527_p12  ;;  %s1080_s17 = sshll.u32 %s1172_s27, 4  ;;  %s1081_s17 = int_to_ptr.vmem [resolvable:$false] %s1080_s17 }
  0x74   : > { %v877_v31 = vpack.c.bf16 %v499_v29, %v498_v28  ;;  %v501_v32 = vld [vmem:[#allocation9 + $0x18] sm:$0xff]  ;;  %v502_v34 = vld [vmem:[#allocation9 + $0x20] sm:$0xff]  ;;  %v503_v35 = vld [vmem:[#allocation9 + $0x28] sm:$0xff]  ;;  %s1082_s14 = scalar_lea.vmem %s1081_s17, 256  ;;  %p1083_p3 = scmp.lt.s32.totalorder %s1454_s18, %s1081_s17 }
  0x75   : > { %857 = vmatpush3.bf16.msra.mxu0 %v856_v8  ;;  %v880_v33 = vpack.c.bf16 %v501_v32, %v500_v30  ;;  %v883_v36 = vpack.c.bf16 %v503_v35, %v502_v34  ;;  %v504_v37 = vld [vmem:[#allocation9 + $0x30] sm:$0xff]  ;;  %v505_v38 = vld [vmem:[#allocation9 + $0x38] sm:$0xff]  ;;  %v506_v40 = vld [vmem:[#allocation9 + $0x40] sm:$0xff]  ;;  %p1079_p10 = pneg %p1078_p1  ;;  %p1084_p5 = scmp.lt.s32.totalorder %s1082_s14, %s1076_s13 }
  0x76   : > { %858 = vmatprep.subr.bf16.mxu0 %v1169_v0  ;;  %878 = vmatpush3.bf16.msra.mxu1 %v877_v31  ;;  %v886_v39 = vpack.c.bf16 %v505_v38, %v504_v37  ;;  %v507_v41 = vld [vmem:[#allocation9 + $0x48] sm:$0xff]  ;;  %v508_v43 = vld [vmem:[#allocation9 + $0x50] sm:$0xff]  ;;  %v509_v44 = vld [vmem:[#allocation9 + $0x58] sm:$0xff] }
  0x77   : > { %879 = vmatprep.subr.bf16.mxu1 %v1169_v0  ;;  %v889_v42 = vpack.c.bf16 %v507_v41, %v506_v40  ;;  %v892_v45 = vpack.c.bf16 %v509_v44, %v508_v43  ;;  %v510_v46 = vld [vmem:[#allocation9 + $0x60] sm:$0xff]  ;;  %v511_v47 = vld [vmem:[#allocation9 + $0x68] sm:$0xff]  ;;  %v740_v59 = vld [vmem:[%s1502_s1] ss:$0 sm:$0xff]  ;;  %p1085_p9 = por %p1084_p5, %p1083_p3 }
  0x78   : > { %v895_v48 = vpack.c.bf16 %v511_v47, %v510_v46  ;;  %v741_v61 = vld [vmem:[%s1503_s2] ss:$0 sm:$0xff]  ;;  %v513_v2 = vld [vmem:[#allocation9 + $0x78] sm:$0xff] }
  0x79   : > { %860 = vmatpush3.bf16.msra.mxu0 %v859_v11  ;;  %v743_v8 = vld [vmem:[%s1507_s6] ss:$0 sm:$0xff]  ;;  %p1086_p11 = pnand %p1085_p9, %p1079_p10 }
  0x7a   : > { %861 = vmatprep.subr.bf16.mxu0 %v1169_v0  ;;  %881 = vmatpush3.bf16.msra.mxu1 %v880_v33 }
  0x7b   : > { %882 = vmatprep.subr.bf16.mxu1 %v1169_v0 }
  0x7d   : > { %863 = vmatpush3.bf16.msra.mxu0 %v862_v14 }
  0x7e   : > { %864 = vmatprep.subr.bf16.mxu0 %v1169_v0  ;;  %884 = vmatpush3.bf16.msra.mxu1 %v883_v36 }
  0x7f   : > { %885 = vmatprep.subr.bf16.mxu1 %v1169_v0 }
  0x81   : > { %866 = vmatpush3.bf16.msra.mxu0 %v865_v17 }
  0x82   : > { %867 = vmatprep.subr.bf16.mxu0 %v1169_v0  ;;  %887 = vmatpush3.bf16.msra.mxu1 %v886_v39 }
  0x83   : > { %888 = vmatprep.subr.bf16.mxu1 %v1169_v0 }
  0x85   : > { %869 = vmatpush3.bf16.msra.mxu0 %v868_v21 }
  0x86   : > { %870 = vmatprep.subr.bf16.mxu0 %v1169_v0  ;;  %890 = vmatpush3.bf16.msra.mxu1 %v889_v42 }
  0x87   : > { %891 = vmatprep.subr.bf16.mxu1 %v1169_v0 }
  0x89   : > { %872 = vmatpush3.bf16.msra.mxu0 %v871_v24 }
  0x8a   : > { %873 = vmatprep.subr.bf16.mxu0 %v1169_v0  ;;  %893 = vmatpush3.bf16.msra.mxu1 %v892_v45 }
  0x8b   : > { %894 = vmatprep.subr.bf16.mxu1 %v1169_v0 }
  0x8d   : > { %875 = vmatpush3.bf16.msra.mxu0 %v874_v27 }
  0x8e   : > { %896 = vmatpush3.bf16.msra.mxu1 %v895_v48 }
  0x8f   : > { %897 = vmatprep.subr.bf16.mxu1 %v1169_v0  ;;  %v512_v0 = vld [vmem:[#allocation9 + $0x70] sm:$0xff] }
  0x90   : > { %v898_v3 = vpack.c.bf16 %v513_v2, %v512_v0 }
  0x92   : > { %899 = vmatpush3.bf16.msra.mxu1 %v898_v3 }
  0xfc   : > { %v371_v49 = vpop.xlane.xlu0 %370 }
  0xfd   : > { %v375_v50 = vmul.f32 0.03125, %v371_v49 }
  0xff   : > { %v377_v52 = vmul.f32 %v375_v50, %v375_v50  ;;  %v380_v57 = vsub.f32 %v1414_v1, %v375_v50  ;;  %v742_v1 = vld [vmem:[%s1505_s4] ss:$0 sm:$0xff] }
 0x100   : > { %v374_v51 = vpop.xlane.xlu0 %373 }
 0x101   : > { %v376_v53 = vmul.f32 0.03125, %v374_v51 }
 0x103   : > { %v378_v54 = vsub.f32 %v376_v53, %v377_v52 }
 0x105   : > { %v379_v55 = vmax.f32 %v378_v54, 0.0 }
 0x107   : > { %v381_v56 = vadd.f32 1e-05, %v379_v55 }
 0x109   : > { %988 = vrsqrt.f32 %v381_v56 }
 0x113   : > { %v989_v58 = vpop.eup %988 }
 0x114   : > { %v383_v60 = vmul.f32 %v989_v58, %v380_v57 }
 0x116   : > { %v391_v62 = vmul.f32 %v740_v59, %v383_v60 }
 0x118   : > { %v399_v63 = vadd.f32 %v741_v61, %v391_v62 }
 0x11a   : > { %815 = vmatmul.mubr.f32.vlgmr.msra.gmra.mrb[0].mxu0 %v399_v63 }
 0x1ed   : > { %v492_v4 = vpop.f32.mrb[0].mxu0 }
 0x1ee   : > { %v493_v5 = vadd.f32 %v742_v1, %v492_v4  ;;  %v816_v6 = vpop.f32.mrb[1].mxu0 }
 0x1f0   : > { %v496_v7 = vmax.f32 %v493_v5, 0.0 }
 0x1f2   : > { %850 = vmatmul.mubr.f32.vlgmr.msra.gmra.mrb[0].mxu1 %v496_v7 }
 0x2c5   : > { %v580_v9 = vpop.f32.mrb[0].mxu1 }
 0x2c6   : > { %v597_v10 = vadd.f32 %v743_v8, %v580_v9  ;;  %v851_v11 = vpop.f32.mrb[1].mxu1 }
 0x2c8   : > { %598 = vst [vmem:[%s360_s22] sm:$0xff] %v597_v10 }
 0x2c9   : > { %1089 = shalt.err (!%p1086_p11)
}
 0x2ca   : > { %s1090_s21 = scalar_lea.hbm %s1452_s9, 128  ;;  %s1094_s12 = scalar_lea.hbm %s1508_s7, 256 }
 0x2cb   : > { %p1091_p0 = scmp.ne.s32.totalorder %s1452_s9, %s1090_s21  ;;  %p1095_p6 = scmp.lt.u32.totalorder %s1452_s9, %s1508_s7 }
 0x2cc   : > { %p1096_p7 = scmp.lt.u32.totalorder %s1094_s12, %s1090_s21  ;;  %p1098_p8 = scmp.lt.u32.totalorder %s1090_s21, %s1452_s9 }
 0x2cd   : > { %p1092_p4 = pnand %p1091_p0, %p1527_p12 }
 0x2ce   : > { %p1097_p2 = por %p1096_p7, %p1095_p6 }
 0x2cf   : > { %p1093_p13 = pneg %p1092_p4 }
 0x2d0   : > { %p1099_p1 = por %p1098_p8, %p1097_p2 }
 0x2d2   : > { %p1100_p10 = pnand %p1099_p1, %p1093_p13 }
 0x2d4   : > { %1103 = shalt.err (!%p1100_p10)
}
 0x2d5   : > { %910 = dma.vmem_to_hbm [thread:$0]  (%p1527_p12), %s1454_s18, 128, %s1452_s9, %s600_s11  }
 0x2d6 PF: > { %s1528_s22 = sld [smem:[#allocation14_spill]]  ;;  %s1529_s30 = sld [smem:[#allocation15_spill]] }
 0x2d7   : > { %p1531_p5 = scmp.ge.s32.totalorder %s1162_s29, 2 }
 0x2dc   : > { %s625_s8 = sand.u32 1, %s1528_s22   ;;  %p1530_p3 = scmp.ne.s32.totalorder %s1529_s30, 0 }
 0x2dd   : > { %s626_s13 = scalar_lea.sflag [#allocation6], %s625_s8 }
 0x2de   : > { %p924_p9 = pnand %p1531_p5, %p1530_p3 }
 0x2e0   : > { %1137 = dma.done.wait (!%p924_p9), %s626_s13, 128  }
 0x2e1   : > { %1139 = vsyncadd (!%p924_p9), %s626_s13, 4294967168  ;;  %s24_s29 = sadd.s32 1, %s1162_s29   ;;  %s1532_s24 = smov %s1146_s25 }
 0x2e2   : > { %p21_p11 = scmp.ge.s32.totalorder %s24_s29, 4   ;;  %s1533_s25 = smov %s1150_s26 }
 0x2e3   : > { %s1534_s26 = smov %s1355_s19  ;;  %s1535_s27 = smov %s1158_s28 }
 0x2e4   : > { %s1536_s28 = smov %s1538_s20  ;;  %23 = sbr.rel (!%p21_p11) target bundleno = 7 (0x7), region = 114 }
 0x2eb   :  { %631 = vsyncpa [#allocation5], 1 }
 0x2ec   :  { %633 = vsyncpa [#allocation5 + $0x1], 1 }
 0x2ed   :  { %634 = vsyncpa [#allocation8], 1 }
 0x2ee   :  { %635 = vsyncpa [#allocation6], 1 }
 0x2ef   :  { %637 = vsyncpa [#allocation6 + $0x1], 1 }

</bundles_post_ra>
